<compile_context>
chip_gen: v7x
topology: tpu7x:2x2x1
jax: 0.10.0
libtpu: 0.0.40
codegen_flags: <defaults>
</compile_context>

<pallas_src>
import functools
import math

import jax
import jax.numpy as jnp
from jax.experimental import pallas as pl
from jax.experimental.pallas import tpu as pltpu


def _round_up(x, m):
    return ((x + m - 1) // m) * m


def _cdiv(a, b):
    return (a + b - 1) // b


def _best_tk(dim):
    """Pick a reduction tile from {512, 256, 128} minimizing padding of `dim`."""
    best_t, best_pad = 512, _round_up(dim, 512)
    for t in (256, 128):
        pad = _round_up(dim, t)
        if pad < best_pad:
            best_t, best_pad = t, pad
    return best_t


def _select_tiles(I, H, vmem_budget):
    """Choose (tn, tkx, tkh, tm_max) so the working set fits the VMEM budget.

    Preference: keep full gate-weight panels VMEM resident (single K tile per
    operand, single hidden tile), then shrink the batch tile, then fall back
    to tiling the hidden / reduction dims.
    """
    base_tn = H if H < 128 else _round_up(H, 128)

    def est(tn, tkx, tkh, tm):
        # f32 activations (worst case), bf16 weights, double-buffered blocks,
        # 4 f32 accumulators + matmul-result temporaries.
        blocks = (tm * tkx * 4 + tm * tkh * 4 + tm * tn * 4
                  + tkx * 3 * tn * 2 + tkh * 3 * tn * 2
                  + 8 * tn * 4 + tm * tn * 4)
        return 2 * blocks + 4 * tm * tn * 4 + 2 * tm * 3 * tn * 4

    cands = []
    for tm_max in (512, 256, 128, 64, 32):
        cands.append((base_tn, I, H, tm_max))            # fully resident weights
    for tn in (512, 256, 128):
        if base_tn > tn:
            for tm_max in (512, 256, 128, 64, 32):
                cands.append((tn, _best_tk(I), _best_tk(H), tm_max))
    cands.append((min(base_tn, 128), _best_tk(I), _best_tk(H), 32))  # last resort
    for tn, tkx, tkh, tm_max in cands:
        if est(tn, tkx, tkh, tm_max) <= vmem_budget:
            return tn, tkx, tkh, tm_max
    return cands[-1]


def _pack_weight(w, rows_pad, H, H_w, tn, dtype):
    """Pack (rows, 3H) [r|z|n] weights into (rows_pad, 3*H_w) with, per hidden
    tile of width tn, the column layout [r | z | n] (one fused dot per step)."""
    rows = w.shape[0]
    gj = H_w // tn
    buf = jnp.zeros((rows_pad, 3, H_w), jnp.float32)
    buf = buf.at[:rows, :, :H].set(w.reshape(rows, 3, H).astype(jnp.float32))
    buf = buf.reshape(rows_pad, 3, gj, tn).transpose(0, 2, 1, 3)
    return buf.reshape(rows_pad, 3 * H_w).astype(dtype)


def _gru_cell_kernel(x_ref, hmm_ref, hbl_ref, wx_ref, wh_ref, b_ref, *rest,
                     nkx, nkh, nk, tn, has_mask):
    """Grid = (batch tiles, hidden tiles, K tiles).

    The x-feature and hidden-feature reductions run side by side on the K axis
    (clamped index maps keep the shorter operand's blocks VMEM resident).
    Gate weights are packed per hidden tile as [r | z | n], so each reduction
    step is a single (tm, 3*tn) MXU matmul whose lane-aligned slices feed the
    r / z / n accumulators.
    """
    if has_mask:
        m_ref = rest[0]
        rest = rest[1:]
    else:
        m_ref = None
    out_ref = rest[0]
    scratch = rest[1:]

    def x_prod():
        return jnp.dot(x_ref[...].astype(jnp.bfloat16), wx_ref[...],
                       preferred_element_type=jnp.float32)

    def h_prod():
        return jnp.dot(hmm_ref[...].astype(jnp.bfloat16), wh_ref[...],
                       preferred_element_type=jnp.float32)

    def sigmoid(v):
        # exp + approx reciprocal stay on the EUP -> keeps the epilogue off the
        # VALU critical path.
        return pl.reciprocal(1.0 + jnp.exp(-v), approx=True)

    def blend(pre_r, pre_z, pre_nx, pre_nh):
        r = sigmoid(pre_r)
        z = sigmoid(pre_z)
        n = jnp.tanh(pre_nx + r * pre_nh)
        h = hbl_ref[...].astype(jnp.float32)
        if has_mask:
            g = m_ref[...].astype(jnp.float32) * (1.0 - z)
            hy = h + g * (n - h)            # == (1 - m(1-z))*h + m(1-z)*n
        else:
            hy = n + z * (h - n)            # == z*h + (1-z)*n
        out_ref[...] = hy.astype(out_ref.dtype)

    if nk == 1:
        # Whole reduction in one grid step: no accumulator round-trip, biases
        # folded straight into the gate pre-activations.
        gx = x_prod()
        gh = h_prod()
        blend(gx[:, :tn] + gh[:, :tn] + b_ref[0:1, :],
              gx[:, tn:2 * tn] + gh[:, tn:2 * tn] + b_ref[1:2, :],
              gx[:, 2 * tn:] + b_ref[2:3, :],
              gh[:, 2 * tn:] + b_ref[3:4, :])
        return

    acc_r, acc_z, acc_nx, acc_nh = scratch
    k = pl.program_id(2)

    @pl.when(k == 0)
    def _init():
        shp = acc_r.shape
        acc_r[...] = jnp.broadcast_to(b_ref[0:1, :], shp)   # bxr + bhr
        acc_z[...] = jnp.broadcast_to(b_ref[1:2, :], shp)   # bxz + bhz
        acc_nx[...] = jnp.broadcast_to(b_ref[2:3, :], shp)  # bxn
        acc_nh[...] = jnp.broadcast_to(b_ref[3:4, :], shp)  # bhn

    def _x_step():
        res = x_prod()
        acc_r[...] += res[:, :tn]
        acc_z[...] += res[:, tn:2 * tn]
        acc_nx[...] += res[:, 2 * tn:]

    def _h_step():
        res = h_prod()
        acc_r[...] += res[:, :tn]
        acc_z[...] += res[:, tn:2 * tn]
        acc_nh[...] += res[:, 2 * tn:]

    if nkx == nk:
        _x_step()
    else:
        pl.when(k < nkx)(_x_step)
    if nkh == nk:
        _h_step()
    else:
        pl.when(k < nkh)(_h_step)

    @pl.when(k == nk - 1)
    def _finalize():
        blend(acc_r[...], acc_z[...], acc_nx[...], acc_nh[...])


class GRUCellPallas:
    """GRU cell with a fused Pallas TPU forward kernel.

    Parameters follow the PyTorch module: x2h/h2h linears with 3*H outputs in
    gate order [r | z | n], init uniform(-1/sqrt(H), 1/sqrt(H)). Weights are
    kept in bf16 for the MXU; gate math runs in f32.
    """

    def __init__(self, input_size, hidden_size, bias=True, key=None,
                 param_dtype=jnp.bfloat16):
        self.input_size = int(input_size)
        self.hidden_size = int(hidden_size)
        self.bias = bias
        self.param_dtype = param_dtype
        I, H = self.input_size, self.hidden_size

        std = 1.0 / math.sqrt(hidden_size)
        if key is None:
            key = jax.random.PRNGKey(0)
        k1, k2, k3, k4 = jax.random.split(key, 4)
        wx = jax.random.uniform(k1, (I, 3 * H), jnp.float32, -std, std)
        wh = jax.random.uniform(k2, (H, 3 * H), jnp.float32, -std, std)
        if bias:
            bx = jax.random.uniform(k3, (3 * H,), jnp.float32, -std, std)
            bh = jax.random.uniform(k4, (3 * H,), jnp.float32, -std, std)
        else:
            bx = jnp.zeros((3 * H,), jnp.float32)
            bh = jnp.zeros((3 * H,), jnp.float32)
        self.wx_q = wx.astype(param_dtype)   # (I, 3H), used by the reference
        self.wh_q = wh.astype(param_dtype)   # (H, 3H)
        self.bx = bx
        self.bh = bh

        # ---- hardware query: generation-gated VMEM budget ----
        vmem_cap = 64 << 20          # conservative default (v7x per-core VMEM)
        try:
            cap = getattr(pltpu.get_tpu_info(), "vmem_capacity_bytes", None)
            if cap:
                vmem_cap = int(cap)
        except Exception:
            pass
        if vmem_cap < (16 << 20):
            vmem_cap = 64 << 20
        self.vmem_cap = vmem_cap

        # ---- tiling (tn / K tiles fixed at init; weights are packed to match) ----
        tn, tkx, tkh, tm_max = _select_tiles(I, H, int(0.6 * vmem_cap))
        if tkx >= I:
            tkx, nkx, I_k = I, 1, I           # single K tile over x features
        else:
            nkx = _cdiv(I, tkx)
            I_k = nkx * tkx
        if tkh >= H:
            tkh, nkh, KH = H, 1, H            # single K tile over h features
        else:
            nkh = _cdiv(H, tkh)
            KH = nkh * tkh
        H_w = _round_up(H, tn)
        self.tn, self.tkx, self.tkh, self.tm_max = tn, tkx, tkh, tm_max
        self.nkx, self.nkh = nkx, nkh
        self.I_k, self.KH, self.H_w = I_k, KH, H_w
        self.grid_j = H_w // tn

        # ---- fused per-gate weight packing (one MXU dot per reduction step) ----
        self.w_x = _pack_weight(wx, I_k, H, H_w, tn, param_dtype)   # (I_k, 3*H_w)
        self.w_h = _pack_weight(wh, KH, H, H_w, tn, param_dtype)    # (KH, 3*H_w)

        # ---- all four bias rows in ONE array: [bxr+bhr, bxz+bhz, bxn, bhn] ----
        b_all = jnp.zeros((8, H_w), jnp.float32)
        b_all = b_all.at[0, :H].set(bx[:H] + bh[:H])
        b_all = b_all.at[1, :H].set(bx[H:2 * H] + bh[H:2 * H])
        b_all = b_all.at[2, :H].set(bx[2 * H:])
        b_all = b_all.at[3, :H].set(bh[2 * H:])
        self.b_all = b_all

    def __call__(self, x, h_old, mask=None):
        # x.view(-1, x.size(1)) equivalent
        x = x.reshape(-1, x.shape[1])
        B = x.shape[0]
        H, I = self.hidden_size, self.input_size
        tn, tkx, tkh = self.tn, self.tkx, self.tkh
        H_w, I_k, KH = self.H_w, self.I_k, self.KH
        nkx, nkh, grid_j = self.nkx, self.nkh, self.grid_j
        nk = max(nkx, nkh)
        out_dtype = h_old.dtype

        # Batch tile: the biggest the VMEM budget allows; 16-row alignment when
        # activations are 16-bit (bf16 sublane packing), 8 otherwise.
        row_align = 16 if (jnp.dtype(x.dtype).itemsize <= 2
                           or jnp.dtype(h_old.dtype).itemsize <= 2) else 8
        tm = min(self.tm_max, _round_up(B, row_align))
        grid_i = _cdiv(B, tm)
        # v7x-style chips (<=64 MiB VMEM, 2 TensorCores): best effort to get
        # >= 2 tiles on the parallel grid axes so both cores are fed.
        if self.vmem_cap <= (64 << 20) and grid_i * grid_j == 1 and B > row_align:
            tm_half = _round_up(_cdiv(B, 2), row_align)
            if tm_half < tm:
                tm = tm_half
                grid_i = _cdiv(B, tm)
        B_pad = grid_i * tm

        def pad_to(a, rows, cols):
            if a.shape == (rows, cols):
                return a                       # zero-copy in the common case
            buf = jnp.zeros((rows, cols), a.dtype)
            return buf.at[:a.shape[0], :a.shape[1]].set(a)

        # Activations stay in their original dtype (cast to bf16 inside the
        # kernel); no packed [x|h] wrapper matrix any more.
        x_p = pad_to(x, B_pad, I_k)
        h_mm = pad_to(h_old, B_pad, KH)                 # matmul operand
        h_bl = h_mm if KH == H_w else pad_to(h_old, B_pad, H_w)   # blend operand
        # TODO(synk): when driving this cell inside a scan, alias the output
        # into the next step's h input (input_output_aliases) to skip the HBM
        # round-trip between time steps.

        if nkx == 1:
            x_idx = lambda i, j, k: (i, 0)
            wx_idx = lambda i, j, k: (0, j)
        else:
            x_idx = lambda i, j, k: (i, jnp.minimum(k, nkx - 1))
            wx_idx = lambda i, j, k: (jnp.minimum(k, nkx - 1), j)
        if nkh == 1:
            hmm_idx = lambda i, j, k: (i, 0)
            wh_idx = lambda i, j, k: (0, j)
        else:
            hmm_idx = lambda i, j, k: (i, jnp.minimum(k, nkh - 1))
            wh_idx = lambda i, j, k: (jnp.minimum(k, nkh - 1), j)

        inputs = [x_p, h_mm, h_bl, self.w_x, self.w_h, self.b_all]
        in_specs = [
            pl.BlockSpec((tm, tkx), x_idx),
            pl.BlockSpec((tm, tkh), hmm_idx),
            pl.BlockSpec((tm, tn), lambda i, j, k: (i, j)),
            pl.BlockSpec((tkx, 3 * tn), wx_idx),
            pl.BlockSpec((tkh, 3 * tn), wh_idx),
            pl.BlockSpec((8, tn), lambda i, j, k: (0, j)),
        ]

        has_mask = mask is not None
        mask_lanes = 0
        if has_mask:
            m = jnp.asarray(mask, jnp.float32)
            if m.ndim == 1:
                m = m[:, None]
            if m.shape[1] == 1:
                inputs.append(pad_to(m, B_pad, 1))
                in_specs.append(pl.BlockSpec((tm, 1), lambda i, j, k: (i, 0)))
                mask_lanes = 1
            else:
                m = jnp.broadcast_to(m, (B, H))
                inputs.append(pad_to(m, B_pad, H_w))
                in_specs.append(pl.BlockSpec((tm, tn), lambda i, j, k: (i, j)))
                mask_lanes = tn

        scratch_shapes = []
        if nk > 1:
            scratch_shapes = [pltpu.VMEM((tm, tn), jnp.float32)] * 4

        # --- VMEM budget (double-buffered blocks + accumulators/temporaries) ---
        xb = jnp.dtype(x_p.dtype).itemsize
        hb = jnp.dtype(h_old.dtype).itemsize
        ob = jnp.dtype(out_dtype).itemsize
        wb = jnp.dtype(self.param_dtype).itemsize
        blocks = (tm * tkx * xb + tm * tkh * hb + tm * tn * hb
                  + tkx * 3 * tn * wb + tkh * 3 * tn * wb
                  + 8 * tn * 4 + tm * tn * ob
                  + (tm * max(1, mask_lanes) * 4 if has_mask else 0))
        vmem_est = (2 * blocks + (4 * tm * tn * 4 if nk > 1 else 0)
                    + 2 * tm * 3 * tn * 4)
        vmem_cap_budget = int(0.75 * self.vmem_cap)    # headroom below physical
        vmem_limit = int(min(vmem_cap_budget,
                             max(32 << 20, vmem_est + (8 << 20))))

        cost = pl.CostEstimate(
            flops=int(2 * B * (I + H) * 3 * H),
            transcendentals=int(4 * B * H),
            bytes_accessed=int(self.w_x.size * wb + self.w_h.size * wb
                               + self.b_all.size * 4
                               + x_p.size * xb + h_mm.size * hb + h_bl.size * hb
                               + B_pad * H_w * ob
                               + (inputs[-1].size * 4 if has_mask else 0)),
        )

        kernel = functools.partial(_gru_cell_kernel, nkx=nkx, nkh=nkh, nk=nk,
                                   tn=tn, has_mask=has_mask)
        out = pl.pallas_call(
            kernel,
            out_shape=jax.ShapeDtypeStruct((B_pad, H_w), out_dtype),
            grid_spec=pltpu.PrefetchScalarGridSpec(
                num_scalar_prefetch=0,
                grid=(grid_i, grid_j, nk),
                in_specs=in_specs,
                out_specs=pl.BlockSpec((tm, tn), lambda i, j, k: (i, j)),
                scratch_shapes=scratch_shapes,
            ),
            compiler_params=pltpu.CompilerParams(
                dimension_semantics=("parallel", "parallel", "arbitrary"),
                vmem_limit_bytes=vmem_limit,
            ),
            cost_estimate=cost,
        )(*inputs)

        if B_pad == B and H_w == H:
            return out
        return out[:B, :H]


def _reference(cell, x, h_old, mask=None):
    """Pure-JAX reference mirroring the PyTorch forward (bf16 weights, f32 math)."""
    x = x.reshape(-1, x.shape[1])
    f32 = jnp.float32
    xq = x.astype(cell.param_dtype).astype(f32)
    hq = h_old.astype(cell.param_dtype).astype(f32)
    wx = cell.wx_q.astype(f32)
    wh = cell.wh_q.astype(f32)
    gate_x = xq @ wx + cell.bx
    gate_h = hq @ wh + cell.bh
    H = cell.hidden_size
    x_r, x_z, x_h = gate_x[:, :H], gate_x[:, H:2 * H], gate_x[:, 2 * H:]
    h_r, h_z, h_h = gate_h[:, :H], gate_h[:, H:2 * H], gate_h[:, 2 * H:]
    r = jax.nn.sigmoid(x_r + h_r)
    z = jax.nn.sigmoid(x_z + h_z)
    h_new = jnp.tanh(x_h + r * h_h)
    h = h_old.astype(f32)
    if mask is None:
        hy = z * h + (1 - z) * h_new
    else:
        m = jnp.asarray(mask, f32)
        if m.ndim == 1:
            m = m[:, None]
        m = jnp.broadcast_to(m, h.shape)
        hy = (1 - m * (1 - z)) * h + m * (1 - z) * h_new
    return hy.astype(h_old.dtype)


if __name__ == "__main__":
    key = jax.random.PRNGKey(0)
    k_param, k_x, k_h, k_m = jax.random.split(key, 4)

    batch, input_size, hidden_size = 8, 16, 32
    cell = GRUCellPallas(input_size, hidden_size, bias=True, key=k_param)

    x = jax.random.normal(k_x, (batch, input_size), jnp.float32)
    h_old = jax.random.normal(k_h, (batch, hidden_size), jnp.float32)
    mask = (jax.random.uniform(k_m, (batch, 1)) > 0.5).astype(jnp.float32)

    # mask=None path
    hy = jax.block_until_ready(cell(x, h_old))
    ref = _reference(cell, x, h_old)
    assert hy.shape == (batch, hidden_size)
    err = float(jnp.max(jnp.abs(hy - ref)))
    assert jnp.allclose(hy, ref, atol=5e-3, rtol=5e-3), err

    # masked path
    hy_m = jax.block_until_ready(cell(x, h_old, mask=mask))
    ref_m = _reference(cell, x, h_old, mask=mask)
    err_m = float(jnp.max(jnp.abs(hy_m - ref_m)))
    assert jnp.allclose(hy_m, ref_m, atol=5e-3, rtol=5e-3), err_m

    print("KERNEL_OK")
</pallas_src>

<mosaic_0001>
module attributes {stable_mosaic.version = 11 : i64} {
  func.func @_gru_cell_kernel(%arg0: i32, %arg1: i32, %arg2: i32, %arg3: memref<8x16xf32, #tpu.memory_space<vmem>>, %arg4: memref<8x32xf32, #tpu.memory_space<vmem>>, %arg5: memref<8x32xf32, #tpu.memory_space<vmem>>, %arg6: memref<16x96xbf16, #tpu.memory_space<vmem>>, %arg7: memref<32x96xbf16, #tpu.memory_space<vmem>>, %arg8: memref<8x32xf32, #tpu.memory_space<vmem>>, %arg9: memref<8x32xf32, #tpu.memory_space<vmem>>) attributes {dimension_semantics = [#tpu.dimension_semantics<parallel>, #tpu.dimension_semantics<parallel>, #tpu.dimension_semantics<arbitrary>], iteration_bounds = array<i64: 1, 1, 1>, scalar_prefetch = 0 : i64, scratch_operands = 0 : i64, tpu.core_type = #tpu.core_type<tc>, window_params = [{transform_indices = @transform_0, window_bounds = array<i64: 8, 16>}, {transform_indices = @transform_1, window_bounds = array<i64: 8, 32>}, {transform_indices = @transform_2, window_bounds = array<i64: 8, 32>}, {transform_indices = @transform_3, window_bounds = array<i64: 16, 96>}, {transform_indices = @transform_4, window_bounds = array<i64: 32, 96>}, {transform_indices = @transform_5, window_bounds = array<i64: 8, 32>}, {transform_indices = @transform_6, window_bounds = array<i64: 8, 32>}]} {
    %c0 = arith.constant 0 : index
    %c0_0 = arith.constant 0 : index
    %0 = vector.load %arg3[%c0, %c0_0] : memref<8x16xf32, #tpu.memory_space<vmem>>, vector<8x16xf32>
    %1 = arith.truncf %0 : vector<8x16xf32> to vector<8x16xbf16>
    %c0_1 = arith.constant 0 : index
    %c0_2 = arith.constant 0 : index
    %2 = vector.load %arg6[%c0_1, %c0_2] : memref<16x96xbf16, #tpu.memory_space<vmem>>, vector<16x96xbf16>
    %cst = arith.constant dense<0.000000e+00> : vector<8x96xf32>
    %3 = tpu.matmul %1, %2, %cst {dimension_numbers = #tpu.dot_dimension_numbers<[1], [0], [0], [1], [0, 0, 1, 1], [], []>} : vector<8x16xbf16>, vector<16x96xbf16>, vector<8x96xf32> -> vector<8x96xf32>
    %c0_3 = arith.constant 0 : index
    %c0_4 = arith.constant 0 : index
    %4 = vector.load %arg4[%c0_3, %c0_4] : memref<8x32xf32, #tpu.memory_space<vmem>>, vector<8x32xf32>
    %5 = arith.truncf %4 : vector<8x32xf32> to vector<8x32xbf16>
    %c0_5 = arith.constant 0 : index
    %c0_6 = arith.constant 0 : index
    %6 = vector.load %arg7[%c0_5, %c0_6] : memref<32x96xbf16, #tpu.memory_space<vmem>>, vector<32x96xbf16>
    %cst_7 = arith.constant dense<0.000000e+00> : vector<8x96xf32>
    %7 = tpu.matmul %5, %6, %cst_7 {dimension_numbers = #tpu.dot_dimension_numbers<[1], [0], [0], [1], [0, 0, 1, 1], [], []>} : vector<8x32xbf16>, vector<32x96xbf16>, vector<8x96xf32> -> vector<8x96xf32>
    %8 = vector.extract_strided_slice %3 {offsets = [0, 0], sizes = [8, 32], strides = [1, 1]} : vector<8x96xf32> to vector<8x32xf32>
    %9 = vector.extract_strided_slice %7 {offsets = [0, 0], sizes = [8, 32], strides = [1, 1]} : vector<8x96xf32> to vector<8x32xf32>
    %10 = arith.addf %8, %9 : vector<8x32xf32>
    %c0_8 = arith.constant 0 : index
    %c0_9 = arith.constant 0 : index
    %11 = vector.load %arg8[%c0_8, %c0_9] : memref<8x32xf32, #tpu.memory_space<vmem>>, vector<1x32xf32>
    %12 = vector.broadcast %11 : vector<1x32xf32> to vector<8x32xf32>
    %13 = arith.addf %10, %12 : vector<8x32xf32>
    %14 = vector.extract_strided_slice %3 {offsets = [0, 32], sizes = [8, 32], strides = [1, 1]} : vector<8x96xf32> to vector<8x32xf32>
    %15 = vector.extract_strided_slice %7 {offsets = [0, 32], sizes = [8, 32], strides = [1, 1]} : vector<8x96xf32> to vector<8x32xf32>
    %16 = arith.addf %14, %15 : vector<8x32xf32>
    %c1 = arith.constant 1 : index
    %c0_10 = arith.constant 0 : index
    %17 = vector.load %arg8[%c1, %c0_10] : memref<8x32xf32, #tpu.memory_space<vmem>>, vector<1x32xf32>
    %18 = vector.broadcast %17 : vector<1x32xf32> to vector<8x32xf32>
    %19 = arith.addf %16, %18 : vector<8x32xf32>
    %20 = vector.extract_strided_slice %3 {offsets = [0, 64], sizes = [8, 32], strides = [1, 1]} : vector<8x96xf32> to vector<8x32xf32>
    %c2 = arith.constant 2 : index
    %c0_11 = arith.constant 0 : index
    %21 = vector.load %arg8[%c2, %c0_11] : memref<8x32xf32, #tpu.memory_space<vmem>>, vector<1x32xf32>
    %22 = vector.broadcast %21 : vector<1x32xf32> to vector<8x32xf32>
    %23 = arith.addf %20, %22 : vector<8x32xf32>
    %24 = vector.extract_strided_slice %7 {offsets = [0, 64], sizes = [8, 32], strides = [1, 1]} : vector<8x96xf32> to vector<8x32xf32>
    %c3 = arith.constant 3 : index
    %c0_12 = arith.constant 0 : index
    %25 = vector.load %arg8[%c3, %c0_12] : memref<8x32xf32, #tpu.memory_space<vmem>>, vector<1x32xf32>
    %26 = vector.broadcast %25 : vector<1x32xf32> to vector<8x32xf32>
    %27 = arith.addf %24, %26 : vector<8x32xf32>
    %cst_13 = arith.constant 0.000000e+00 : f32
    %28 = vector.broadcast %cst_13 : f32 to vector<8x32xf32>
    %29 = arith.subf %28, %13 : vector<8x32xf32>
    %30 = math.exp %29 : vector<8x32xf32>
    %cst_14 = arith.constant 1.000000e+00 : f32
    %31 = vector.broadcast %cst_14 : f32 to vector<8x32xf32>
    %32 = arith.addf %31, %30 : vector<8x32xf32>
    %33 = tpu.reciprocal %32 {approx = true} : vector<8x32xf32> -> vector<8x32xf32>
    %cst_15 = arith.constant 0.000000e+00 : f32
    %34 = vector.broadcast %cst_15 : f32 to vector<8x32xf32>
    %35 = arith.subf %34, %19 : vector<8x32xf32>
    %36 = math.exp %35 : vector<8x32xf32>
    %cst_16 = arith.constant 1.000000e+00 : f32
    %37 = vector.broadcast %cst_16 : f32 to vector<8x32xf32>
    %38 = arith.addf %37, %36 : vector<8x32xf32>
    %39 = tpu.reciprocal %38 {approx = true} : vector<8x32xf32> -> vector<8x32xf32>
    %40 = arith.mulf %33, %27 : vector<8x32xf32>
    %41 = arith.addf %23, %40 : vector<8x32xf32>
    %42 = math.tanh %41 : vector<8x32xf32>
    %c0_17 = arith.constant 0 : index
    %c0_18 = arith.constant 0 : index
    %43 = vector.load %arg5[%c0_17, %c0_18] : memref<8x32xf32, #tpu.memory_space<vmem>>, vector<8x32xf32>
    %44 = arith.subf %43, %42 : vector<8x32xf32>
    %45 = arith.mulf %39, %44 : vector<8x32xf32>
    %46 = arith.addf %42, %45 : vector<8x32xf32>
    %c0_19 = arith.constant 0 : index
    %c0_20 = arith.constant 0 : index
    %47 = vector.load %arg9[%c0_19, %c0_20] : memref<8x32xf32, #tpu.memory_space<vmem>>, vector<8x32xf32>
    tpu.vector_store %arg9[%c0_19, %c0_20], %46 {strides = array<i32>} : memref<8x32xf32, #tpu.memory_space<vmem>>, vector<8x32xf32>,
    return
  }
  func.func @transform_0(%arg0: i32, %arg1: i32, %arg2: i32) -> (i32, i32) {
    %c0_i32 = arith.constant 0 : i32
    %c0_i32_0 = arith.constant 0 : i32
    return %arg0, %c0_i32 : i32, i32
  }
  func.func @transform_1(%arg0: i32, %arg1: i32, %arg2: i32) -> (i32, i32) {
    %c0_i32 = arith.constant 0 : i32
    %c0_i32_0 = arith.constant 0 : i32
    return %arg0, %c0_i32 : i32, i32
  }
  func.func @transform_2(%arg0: i32, %arg1: i32, %arg2: i32) -> (i32, i32) {
    %c0_i32 = arith.constant 0 : i32
    return %arg0, %arg1 : i32, i32
  }
  func.func @transform_3(%arg0: i32, %arg1: i32, %arg2: i32) -> (i32, i32) {
    %c0_i32 = arith.constant 0 : i32
    %c0_i32_0 = arith.constant 0 : i32
    return %c0_i32, %arg1 : i32, i32
  }
  func.func @transform_4(%arg0: i32, %arg1: i32, %arg2: i32) -> (i32, i32) {
    %c0_i32 = arith.constant 0 : i32
    %c0_i32_0 = arith.constant 0 : i32
    return %c0_i32, %arg1 : i32, i32
  }
  func.func @transform_5(%arg0: i32, %arg1: i32, %arg2: i32) -> (i32, i32) {
    %c0_i32 = arith.constant 0 : i32
    %c0_i32_0 = arith.constant 0 : i32
    return %c0_i32, %arg1 : i32, i32
  }
  func.func @transform_6(%arg0: i32, %arg1: i32, %arg2: i32) -> (i32, i32) {
    %c0_i32 = arith.constant 0 : i32
    return %arg0, %arg1 : i32, i32
  }
}

</mosaic_0001>

<bundles_post_ra>
// kernel: tpu_custom_call.1
= control target key start
LH: loop header
LB: loop body
LE: loop exit
PB: predicated region body
PF: predicated region fallthrough
CT: control target
= control target key end

     0   :  { %11 = vsyncpa [#allocation3], 0  ;;  %s592_s0 = inlined_call_operand.hbm [shape: f32[8,16], index: 0, kind: input, shape index: {}]   ;;  %s593_s1 = inlined_call_operand.hbm [shape: f32[8,32], index: 1, kind: input, shape index: {}]   ;;  %s594_s2 = inlined_call_operand.hbm [shape: f32[8,32], index: 2, kind: input, shape index: {}]   ;;  %s595_s3 = inlined_call_operand.vmem [shape: bf16[16,96], index: 3, kind: input, shape index: {}]   ;;  %s596_s4 = inlined_call_operand.hbm [shape: bf16[32,96], index: 4, kind: input, shape index: {}]   ;;  %s597_s5 = inlined_call_operand.vmem [shape: f32[8,32], index: 5, kind: input, shape index: {}]   ;;  %s598_s6 = inlined_call_operand.hbm [shape: f32[8,32], index: 6, kind: output, shape index: {}]  }
   0x1   :  { %12 = vsyncpa [#allocation6], 0 }
   0x2   :  { %13 = vsyncpa [#allocation9], 0 }
   0x3   :  { %14 = vsyncpa [#allocation4], 0  ;;  %s455_s21 = smov [#allocation5]   ;;  %s456_s23 = smov [#allocation2]  }
   0x4   :  { %s31_s22 = sshll.u32 %s455_s21, 4  ;;  %s21_s24 = sshll.u32 %s456_s23, 4  ;;  %s32_s22 = int_to_ptr.vmem [resolvable:$true] %s31_s22  ;;  %s22_s24 = int_to_ptr.vmem [resolvable:$true] %s21_s24 }
   0x5   :  { %s337_s27 = scalar_lea.hbm %s593_s1, 128 }
   0x6   :  { %p338_p0 = scmp.ne.s32.totalorder %s593_s1, %s337_s27  ;;  %p341_p1 = scmp.lt.u32.totalorder %s337_s27, %s593_s1 }
   0x8   :  { %p343_p2 = pnand %p341_p1, %p338_p0 }
   0xa   :  { %346 = shalt.err (!%p343_p2)
}
   0xb   :  { %s347_s8 = scalar_lea.vmem %s32_s22, 128  ;;  %p352_p4 = scmp.lt.s32.totalorder %s32_s22, %s32_s22 }
   0xc   :  { %p348_p3 = scmp.ne.s32.totalorder %s32_s22, %s347_s8  ;;  %p353_p5 = scmp.lt.s32.totalorder %s347_s8, %s347_s8 }
   0xe   :  { %p354_p6 = por %p353_p5, %p352_p4 }
  0x10   :  { %p355_p7 = pnand %p354_p6, %p348_p3 }
  0x12   :  { %358 = shalt.err (!%p355_p7)
}
  0x13   :  { %34 = dma.hbm_to_vmem [thread:$0]  %s593_s1, 128, %s32_s22, [#allocation6]  }
  0x14   :  { %s359_s13 = scalar_lea.hbm %s592_s0, 128 }
  0x15   :  { %p360_p8 = scmp.ne.s32.totalorder %s592_s0, %s359_s13  ;;  %p363_p9 = scmp.lt.u32.totalorder %s359_s13, %s592_s0 }
  0x17   :  { %p365_p10 = pnand %p363_p9, %p360_p8 }
  0x19   :  { %368 = shalt.err (!%p365_p10)
}
  0x1a   :  { %s369_s18 = scalar_lea.vmem %s22_s24, 128  ;;  %p374_p12 = scmp.lt.s32.totalorder %s22_s24, %s22_s24 }
  0x1b   :  { %p370_p11 = scmp.ne.s32.totalorder %s22_s24, %s369_s18  ;;  %p375_p13 = scmp.lt.s32.totalorder %s369_s18, %s369_s18 }
  0x1d   :  { %p376_p0 = por %p375_p13, %p374_p12 }
  0x1f   :  { %p377_p1 = pnand %p376_p0, %p370_p11 }
  0x21   :  { %380 = shalt.err (!%p377_p1)
}
  0x22   :  { %24 = dma.hbm_to_vmem [thread:$0]  %s592_s0, 128, %s22_s24, [#allocation3]  }
  0x23   :  { %s457_s20 = smov [#allocation7]   ;;  %s458_s22 = smov [#allocation8]  }
  0x24   :  { %s41_s21 = sshll.u32 %s457_s20, 4  ;;  %s52_s23 = sshll.u32 %s458_s22, 4  ;;  %s42_s21 = int_to_ptr.vmem [resolvable:$true] %s41_s21  ;;  %s524_s23 = int_to_ptr.vmem [resolvable:$true] %s52_s23 }
  0x25   :  { %s381_s27 = scalar_lea.hbm %s594_s2, 128 }
  0x26   :  { %p382_p2 = scmp.ne.s32.totalorder %s594_s2, %s381_s27  ;;  %p385_p3 = scmp.lt.u32.totalorder %s381_s27, %s594_s2 }
  0x28   :  { %p387_p4 = pnand %p385_p3, %p382_p2 }
  0x2a   :  { %390 = shalt.err (!%p387_p4)
}
  0x2b   :  { %s391_s0 = scalar_lea.vmem %s42_s21, 128  ;;  %p396_p6 = scmp.lt.s32.totalorder %s42_s21, %s42_s21 }
  0x2c   :  { %p392_p5 = scmp.ne.s32.totalorder %s42_s21, %s391_s0  ;;  %p397_p7 = scmp.lt.s32.totalorder %s391_s0, %s391_s0 }
  0x2e   :  { %p398_p8 = por %p397_p7, %p396_p6 }
  0x30   :  { %p399_p9 = pnand %p398_p8, %p392_p5 }
  0x32   :  { %402 = shalt.err (!%p399_p9)
}
  0x33   :  { %44 = dma.hbm_to_vmem [thread:$0]  %s594_s2, 128, %s42_s21, [#allocation6]  }
  0x34   :  { %s403_s11 = scalar_lea.hbm %s596_s4, 256 }
  0x35   :  { %p404_p10 = scmp.ne.s32.totalorder %s596_s4, %s403_s11  ;;  %p407_p11 = scmp.lt.u32.totalorder %s403_s11, %s596_s4 }
  0x37   :  { %p409_p12 = pnand %p407_p11, %p404_p10 }
  0x39   :  { %412 = shalt.err (!%p409_p12)
}
  0x3a   :  { %s413_s16 = scalar_lea.vmem %s524_s23, 256  ;;  %p418_p0 = scmp.lt.s32.totalorder %s524_s23, %s524_s23 }
  0x3b   :  { %p414_p13 = scmp.ne.s32.totalorder %s524_s23, %s413_s16  ;;  %p419_p1 = scmp.lt.s32.totalorder %s413_s16, %s413_s16 }
  0x3d   :  { %p420_p2 = por %p419_p1, %p418_p0 }
  0x3f   :  { %p421_p3 = pnand %p420_p2, %p414_p13 }
  0x41   :  { %424 = shalt.err (!%p421_p3)
}
  0x42   :  { %s459_s2 = smov 64   ;;  %s460_s17 = smov 4  }
  0x43   :  { %58 = dma.hbm_to_vmem [thread:$0]  %s596_s4, 256, %s524_s23, [#allocation9], %s459_s2, %s459_s2, %s460_s17  }
  0x44   :  { %447 = dma.done.wait [#allocation3], 128  }
  0x45   :  { %448 = vsyncadd [#allocation3], 4294967168 }
  0x46   :  { %449 = dma.done.wait [#allocation6], 256  }
  0x47   :  { %450 = vsyncadd [#allocation6], 4294967040 }
  0x48   :  { %451 = dma.done.wait [#allocation9], 256  }
  0x49   :  { %452 = vsyncadd [#allocation9], 4294967040  ;;  %v461_v0 = vmov 0.0   ;;  %vm462_vm0 = vmmov 0   ;;  %v324_v1 = vld [vmem:[#allocation8] sm:$0xff]   ;;  %v325_v2 = vld [vmem:[%s595_s3] sm:$0xff]  }
  0x4a   :  { %306 = vmatprep.subr.bf16.mxu1 %v461_v0  ;;  %300 = vmatprep.subr.bf16.mxu0 %v461_v0  ;;  %v326_v3 = vld [vmem:[#allocation8 + $0x8] sm:$0xff]   ;;  %vm84_vm1 = vcmask 130048   ;;  %v128_v5 = vld [vmem:[#allocation5] sm:$0xff]  ;;  %vm146_vm2 = vcmask 261120   ;;  %s463_s28 = smov 32   ;;  %v248_v36 = vld [vmem:[#allocation7] sm:$0xff] }
  0x4b   :  { %302 = vmatprep.mubr.msk.bf16.mxu0 %vm462_vm0, %v461_v0  ;;  %310 = vmatprep.mubr.msk.bf16.mxu1 %vm462_vm0, %v461_v0  ;;  %v74_v4 = vld [vmem:[#allocation2] sm:$0xff]  ;;  %v129_v9 = vpack.c.bf16 %v128_v5, %v128_v5 }
  0x4c   :  { %307 = vmatpush3.bf16.msra.mxu1 %v324_v1  ;;  %301 = vmatpush3.bf16.msra.mxu0 %v325_v2  ;;  %v294_v6 = vld [vmem:[%s597_s5 + $0x3] ss:$0 sm:$0xff]  ;;  %v75_v7 = vpack.c.bf16 %v74_v4, %v74_v4  ;;  %v293_v8 = vld [vmem:[%s597_s5 + $0x2] ss:$0 sm:$0xff]  ;;  %v291_v21 = vld [vmem:[%s597_s5] ss:$0 sm:$0xff] }
  0x4d   :  { %308 = vmatprep.subr.bf16.mxu1 %v461_v0  ;;  %223 = vrot.lane.b32.xlu0 %v294_v6, %s459_s2  ;;  %v292_v30 = vld [vmem:[%s597_s5 + $0x1] ss:$0 sm:$0xff]  ;;  %s464_s5 = smov [#allocation10]  }
  0x4e   :  { %213 = vrot.lane.b32.xlu1 %v293_v8, %s459_s2  ;;  %s275_s29 = sshll.u32 %s464_s5, 4  ;;  %s276_s29 = int_to_ptr.vmem [resolvable:$true] %s275_s29 }
  0x4f   :  { %303 = vmatmul.mubr.msk.bf16.vlgmr.msra.gmra.mrb[0].mxu0 %vm84_vm1, %v75_v7  ;;  %s425_s30 = scalar_lea.vmem %s276_s29, 128  ;;  %p430_p5 = scmp.lt.s32.totalorder %s276_s29, %s276_s29 }
  0x50   :  { %309 = vmatpush3.bf16.msra.mxu1 %v326_v3  ;;  %p426_p4 = scmp.ne.s32.totalorder %s276_s29, %s425_s30  ;;  %p431_p6 = scmp.lt.s32.totalorder %s425_s30, %s425_s30 }
  0x52   :  { %p432_p7 = por %p431_p6, %p430_p5 }
  0x53   :  { %311 = vmatmul.mubr.msk.bf16.vlgmr.msra.gmra.mrb[0].mxu1 %vm146_vm2, %v129_v9 }
  0x54   :  { %p433_p8 = pnand %p432_p7, %p426_p4 }
  0xbf   :  { %v224_v11 = vpop.permute.xlu0 %223 }
  0xc0   :  { %v214_v31 = vpop.permute.xlu1 %213 }
 0x122   :  { %v122_v10 = vpop.f32.mrb[0].mxu0 }
 0x123   :  { %v304_v12 = vpop.f32.mrb[1].mxu0  ;;  %v216_v32 = vadd.f32 %v214_v31, %v122_v10 }
 0x124   :  { %v125_v13 = vpop.f32.mrb[2].mxu0 }
 0x125   :  { %v305_v15 = vpop.f32.mrb[3].mxu0 }
 0x126   :  { %v184_v14 = vpop.f32.mrb[0].mxu1 }
 0x127   :  { %v190_v16 = vadd.f32 %v184_v14, %v122_v10  ;;  %v312_v17 = vpop.f32.mrb[1].mxu1  ;;  %v226_v18 = vadd.f32 %v224_v11, %v184_v14 }
 0x128   :  { %v187_v19 = vpop.f32.mrb[2].mxu1 }
 0x129   :  { %238 = vrot.lane.b32.xlu0 %v226_v18, %s459_s2  ;;  %v313_v20 = vpop.f32.mrb[3].mxu1  ;;  %v196_v22 = vadd.f32 %v291_v21, %v190_v16 }
 0x12b   :  { %v227_v23 = vsub.f32 0.0, %v196_v22 }
 0x12d   :  { %v228_v24 = vmul.f32 1.442695, %v227_v23 }
 0x12f   :  { %327 = vpow2.f32 %v228_v24 }
 0x139   :  { %v328_v25 = vpop.eup %327 }
 0x13a   :  { %v230_v26 = vadd.f32 1.0, %v328_v25 }
 0x13c   :  { %329 = vrcp.f32 %v230_v26 }
 0x146   :  { %v330_v27 = vpop.eup %329 }
 0x19b   :  { %v239_v28 = vpop.permute.xlu0 %238 }
 0x19c   :  { %v241_v29 = vmul.f32 %v330_v27, %v239_v28 }
 0x19e   :  { %243 = vrot.lane.b32.xlu1 %v241_v29, %s459_s2 }
 0x1a2   :  { %203 = vrot.lane.b32.xlu1 %v292_v30, %s463_s28 }
 0x210   :  { %v244_v33 = vpop.permute.xlu1 %243 }
 0x211   :  { %v246_v34 = vadd.f32 %v244_v33, %v216_v32 }
 0x213   :  { %331 = vtanh.f32 %v246_v34 }
 0x214   :  { %v204_v39 = vpop.permute.xlu1 %203 }
 0x215   :  { %v206_v40 = vadd.f32 %v204_v39, %v190_v16 }
 0x217   :  { %v232_v41 = vsub.f32 0.0, %v206_v40 }
 0x219   :  { %v233_v42 = vmul.f32 1.442695, %v232_v41 }
 0x21b   :  { %333 = vpow2.f32 %v233_v42 }
 0x21d   :  { %v332_v35 = vpop.eup %331 }
 0x21e   :  { %250 = vrot.lane.b32.xlu0 %v332_v35, %s459_s2 }
 0x225   :  { %v334_v43 = vpop.eup %333 }
 0x226   :  { %v235_v44 = vadd.f32 1.0, %v334_v43 }
 0x228   :  { %335 = vrcp.f32 %v235_v44 }
 0x232   :  { %v336_v45 = vpop.eup %335 }
 0x290   :  { %v251_v37 = vpop.permute.xlu0 %250 }
 0x291   :  { %v253_v38 = vsub.f32 %v248_v36, %v251_v37 }
 0x293   :  { %255 = vrot.lane.b32.xlu0 %v253_v38, %s463_s28 }
 0x305   :  { %v256_v46 = vpop.permute.xlu0 %255 }
 0x306   :  { %v258_v47 = vmul.f32 %v336_v45, %v256_v46 }
 0x308   :  { %260 = vrot.lane.b32.xlu1 %v258_v47, %s463_s28 }
 0x37a   :  { %v261_v48 = vpop.permute.xlu1 %260 }
 0x37b   :  { %v263_v49 = vadd.f32 %v332_v35, %v261_v48 }
 0x37d   :  { %265 = vrot.lane.b32.xlu0 %v263_v49, %s459_s2 }
 0x3ef   :  { %v266_v50 = vpop.permute.xlu0 %265 }
 0x3f0   :  { %268 = vst.msk [vmem:[#allocation10] sm:$0xff] %vm146_vm2, %v266_v50 }
 0x3f1   :  { %436 = shalt.err (!%p433_p8)
}
 0x3f2   :  { %s437_s24 = scalar_lea.hbm %s598_s6, 128 }
 0x3f3   :  { %p438_p9 = scmp.ne.s32.totalorder %s598_s6, %s437_s24  ;;  %p441_p10 = scmp.lt.u32.totalorder %s437_s24, %s598_s6 }
 0x3f5   :  { %p443_p11 = pnand %p441_p10, %p438_p9 }
 0x3f7   :  { %446 = shalt.err (!%p443_p11)
}
 0x3f8   :  { %278 = dma.vmem_to_hbm [thread:$0]  %s276_s29, 128, %s598_s6, [#allocation4]  }
 0x3f9   :  { %453 = dma.done.wait [#allocation4], 128  }
 0x3fa   :  { %454 = vsyncadd [#allocation4], 4294967168 }
 0x3fb   :  { %282 = vsyncpa [#allocation3], 1 }
 0x3fc   :  { %283 = vsyncpa [#allocation6], 1 }
 0x3fd   :  { %284 = vsyncpa [#allocation9], 1 }
 0x3fe   :  { %285 = vsyncpa [#allocation4], 1 }

</bundles_post_ra>
